<compile_context>
chip_gen: v7x
topology: tpu7x:2x2x1
jax: 0.10.0
libtpu: 0.0.40
codegen_flags: <defaults>
</compile_context>

<pallas_src>
import functools
import math

import jax
import jax.numpy as jnp
from jax.experimental import pallas as pl
from jax.experimental.pallas import tpu as pltpu


def _additive_attention_kernel(b2_ref, x_ref, *rest, has_mask):
    if has_mask:
        mask_ref, w1_ref, b1_ref, w2_ref, o_ref = rest
    else:
        mask_ref = None
        w1_ref, b1_ref, w2_ref, o_ref = rest

    x = x_ref[...].astype(jnp.float32)                      # [TB, N, D]
    tb, n, d = x.shape
    h = w1_ref.shape[-1]

    # att_fc1 + tanh: one MXU matmul over the flattened (TB*N, D) slab.
    e = jnp.tanh(
        jnp.dot(x.reshape(tb * n, d), w1_ref[...],
                preferred_element_type=jnp.float32) + b1_ref[...]   # [TB*N, H]
    ).reshape(tb, n, h)

    # att_fc2 (Linear(H, 1)) as a lane reduction; scalar bias from SMEM.
    logits = jnp.sum(e * w2_ref[...], axis=-1) + b2_ref[0]          # [TB, N]

    # alpha = exp(logits) (EUP), optionally masked (mask also zeroes padded rows).
    alpha = jnp.exp(logits)                                         # [TB, N]
    if has_mask:
        alpha = alpha * mask_ref[...].astype(jnp.float32)

    # Normalize per row: reciprocal on the [TB,1] denominator (EUP), then VPU mul.
    denom = jnp.sum(alpha, axis=-1, keepdims=True) + 1e-8           # [TB, 1]
    alpha = alpha * pl.reciprocal(denom, approx=True)               # [TB, N]

    # out[b, d] = sum_n alpha[b, n] * x[b, n, d]   (== bmm(x^T, alpha))
    out = jnp.sum(x * alpha[:, :, None], axis=1)                    # [TB, D]
    o_ref[...] = out.astype(o_ref.dtype)


def additive_attention(x, params, attn_mask=None, *, batch_block=512,
                       x_tile_bytes=8 * 1024 * 1024):
    """x: [B, N, D] (f32 or bf16), attn_mask: [B, N] or None.

    params: dict with
      W1: [D, H], b1: [H]   (att_fc1, stored transposed vs. torch weight [H, D])
      W2: [H],    b2: []    (att_fc2 Linear(H, 1))
    Returns: [B, D] in x.dtype.
    """
    B, N, D = x.shape
    W1 = params["W1"].astype(jnp.float32)                  # [D, H]
    H = W1.shape[1]
    b1 = params["b1"].reshape(1, H).astype(jnp.float32)    # [1, H]
    W2 = params["W2"].reshape(1, H).astype(jnp.float32)    # [1, H]
    b2 = params["b2"].reshape(1).astype(jnp.float32)       # [1]  -> SMEM

    # Batch tile: multiple of 8 sublanes, as large as the VMEM budget / batch allow.
    bytes_per_row = 4 * N * D                               # f32-equivalent x row
    tb_vmem = max(8, (x_tile_bytes // bytes_per_row) // 8 * 8)
    b_ceil = pl.cdiv(B, 8) * 8
    TB = int(min(max(8, (int(batch_block) // 8) * 8), tb_vmem, b_ceil))
    B_pad = pl.cdiv(B, TB) * TB

    has_mask = attn_mask is not None

    def _pad_rows(a):
        if a.shape[0] == B_pad:
            return a
        widths = [(0, B_pad - a.shape[0])] + [(0, 0)] * (a.ndim - 1)
        return jnp.pad(a, widths)          # padded rows -> mask 0 / x 0 -> discarded

    in_specs = [
        pl.BlockSpec(memory_space=pltpu.MemorySpace.SMEM),          # b2 (scalar)
        pl.BlockSpec((TB, N, D), lambda b: (b, 0, 0)),              # x     (tiled)
    ]
    operands = [b2, _pad_rows(x)]
    if has_mask:
        in_specs.append(pl.BlockSpec((TB, N), lambda b: (b, 0)))    # mask  (tiled)
        operands.append(_pad_rows(attn_mask.astype(jnp.float32)))
    in_specs += [
        pl.BlockSpec((D, H), lambda b: (0, 0)),                     # W1 (resident)
        pl.BlockSpec((1, H), lambda b: (0, 0)),                     # b1 (resident)
        pl.BlockSpec((1, H), lambda b: (0, 0)),                     # W2 (resident)
    ]
    operands += [W1, b1, W2]

    out = pl.pallas_call(
        functools.partial(_additive_attention_kernel, has_mask=has_mask),
        out_shape=jax.ShapeDtypeStruct((B_pad, D), x.dtype),
        grid=(B_pad // TB,),
        in_specs=in_specs,
        out_specs=pl.BlockSpec((TB, D), lambda b: (b, 0)),
        compiler_params=pltpu.CompilerParams(
            dimension_semantics=("parallel",)),
    )(*operands)

    return out[:B]


def _additive_attention_ref(x, params, attn_mask=None):
    """Pure-JAX reference mirroring the PyTorch forward."""
    x = x.astype(jnp.float32)
    e = jnp.tanh(x @ params["W1"] + params["b1"])                  # [B, N, H]
    alpha = jnp.exp(jnp.sum(e * params["W2"], axis=-1, keepdims=True)
                    + params["b2"])                                # [B, N, 1]
    if attn_mask is not None:
        alpha = alpha * attn_mask[..., None]
    alpha = alpha / (jnp.sum(alpha, axis=1, keepdims=True) + 1e-8)
    return jnp.einsum("bnd,bn->bd", x, alpha[..., 0])


def _init_params(key, d_h, hidden_size):
    """nn.Linear-style uniform init; W1 stored as [D, H] (transposed vs torch)."""
    k1, k2, k3, k4 = jax.random.split(key, 4)
    bound1 = 1.0 / math.sqrt(d_h)
    bound2 = 1.0 / math.sqrt(hidden_size)
    return {
        "W1": jax.random.uniform(k1, (d_h, hidden_size), jnp.float32, -bound1, bound1),
        "b1": jax.random.uniform(k2, (hidden_size,), jnp.float32, -bound1, bound1),
        "W2": jax.random.uniform(k3, (hidden_size,), jnp.float32, -bound2, bound2),
        "b2": jax.random.uniform(k4, (), jnp.float32, -bound2, bound2),
    }


if __name__ == "__main__":
    key = jax.random.PRNGKey(0)
    kx, km, kp = jax.random.split(key, 3)

    B, N, D, H = 16, 8, 64, 32          # batch, candidate_size, d_h, hidden_size
    x = jax.random.normal(kx, (B, N, D), jnp.float32)
    attn_mask = (jax.random.uniform(km, (B, N)) > 0.3).astype(jnp.float32)
    attn_mask = attn_mask.at[:, 0].set(1.0)   # keep at least one valid item per row

    params = _init_params(kp, d_h=D, hidden_size=H)

    # Masked path.
    out = jax.block_until_ready(additive_attention(x, params, attn_mask))
    ref = _additive_attention_ref(x, params, attn_mask)
    assert out.shape == (B, D)
    assert jnp.allclose(out, ref, rtol=1e-2, atol=1e-2), "mismatch vs reference (mask)"

    # No-mask path (separate kernel variant, no mask DMA).
    out_nm = jax.block_until_ready(additive_attention(x, params, None))
    ref_nm = _additive_attention_ref(x, params, None)
    assert jnp.allclose(out_nm, ref_nm, rtol=1e-2, atol=1e-2), "mismatch vs reference"

    print("KERNEL_OK")
</pallas_src>

<mosaic_0001>
module attributes {stable_mosaic.version = 11 : i64} {
  func.func @_additive_attention_kernel(%arg0: i32, %arg1: memref<1xf32, #tpu.memory_space<smem>>, %arg2: memref<16x8x64xf32, #tpu.memory_space<vmem>>, %arg3: memref<16x8xf32, #tpu.memory_space<vmem>>, %arg4: memref<64x32xf32, #tpu.memory_space<vmem>>, %arg5: memref<1x32xf32, #tpu.memory_space<vmem>>, %arg6: memref<1x32xf32, #tpu.memory_space<vmem>>, %arg7: memref<16x64xf32, #tpu.memory_space<vmem>>) attributes {dimension_semantics = [#tpu.dimension_semantics<parallel>], iteration_bounds = array<i64: 1>, scalar_prefetch = 0 : i64, scratch_operands = 0 : i64, tpu.core_type = #tpu.core_type<tc>, window_params = [{transform_indices = @transform_0, window_bounds = array<i64: 1>}, {transform_indices = @transform_1, window_bounds = array<i64: 16, 8, 64>}, {transform_indices = @transform_2, window_bounds = array<i64: 16, 8>}, {pipeline_mode = #tpu.pipeline_mode<synchronous>, transform_indices = @transform_3, window_bounds = array<i64: 64, 32>}, {pipeline_mode = #tpu.pipeline_mode<synchronous>, transform_indices = @transform_4, window_bounds = array<i64: 1, 32>}, {pipeline_mode = #tpu.pipeline_mode<synchronous>, transform_indices = @transform_5, window_bounds = array<i64: 1, 32>}, {transform_indices = @transform_6, window_bounds = array<i64: 16, 64>}]} {
    %c0 = arith.constant 0 : index
    %c0_0 = arith.constant 0 : index
    %c0_1 = arith.constant 0 : index
    %0 = vector.load %arg2[%c0, %c0_0, %c0_1] : memref<16x8x64xf32, #tpu.memory_space<vmem>>, vector<16x8x64xf32>
    %1 = vector.shape_cast %0 : vector<16x8x64xf32> to vector<128x64xf32>
    %c0_2 = arith.constant 0 : index
    %c0_3 = arith.constant 0 : index
    %2 = vector.load %arg4[%c0_2, %c0_3] : memref<64x32xf32, #tpu.memory_space<vmem>>, vector<64x32xf32>
    %cst = arith.constant dense<0.000000e+00> : vector<128x32xf32>
    %3 = tpu.matmul %1, %2, %cst {dimension_numbers = #tpu.dot_dimension_numbers<[1], [0], [0], [1], [0, 0, 1, 1], [], []>} : vector<128x64xf32>, vector<64x32xf32>, vector<128x32xf32> -> vector<128x32xf32>
    %c0_4 = arith.constant 0 : index
    %c0_5 = arith.constant 0 : index
    %4 = vector.load %arg5[%c0_4, %c0_5] : memref<1x32xf32, #tpu.memory_space<vmem>>, vector<1x32xf32>
    %5 = vector.broadcast %4 : vector<1x32xf32> to vector<128x32xf32>
    %6 = arith.addf %3, %5 : vector<128x32xf32>
    %7 = math.tanh %6 : vector<128x32xf32>
    %8 = vector.shape_cast %7 : vector<128x32xf32> to vector<16x8x32xf32>
    %c0_6 = arith.constant 0 : index
    %c0_7 = arith.constant 0 : index
    %9 = vector.load %arg6[%c0_6, %c0_7] : memref<1x32xf32, #tpu.memory_space<vmem>>, vector<1x32xf32>
    %10 = vector.shape_cast %9 : vector<1x32xf32> to vector<1x1x32xf32>
    %11 = vector.broadcast %10 : vector<1x1x32xf32> to vector<16x8x32xf32>
    %12 = arith.mulf %8, %11 : vector<16x8x32xf32>
    %cst_8 = arith.constant dense<0.000000e+00> : vector<16x8xf32>
    %13 = vector.multi_reduction <add>, %12, %cst_8 [2] : vector<16x8x32xf32> to vector<16x8xf32>
    %c0_9 = arith.constant 0 : index
    %14 = memref.load %arg1[%c0_9] : memref<1xf32, #tpu.memory_space<smem>>
    %15 = vector.broadcast %14 : f32 to vector<16x8xf32>
    %16 = arith.addf %13, %15 : vector<16x8xf32>
    %17 = math.exp %16 : vector<16x8xf32>
    %c0_10 = arith.constant 0 : index
    %c0_11 = arith.constant 0 : index
    %18 = vector.load %arg3[%c0_10, %c0_11] : memref<16x8xf32, #tpu.memory_space<vmem>>, vector<16x8xf32>
    %19 = arith.mulf %17, %18 : vector<16x8xf32>
    %cst_12 = arith.constant dense<0.000000e+00> : vector<16xf32>
    %20 = vector.multi_reduction <add>, %19, %cst_12 [1] : vector<16x8xf32> to vector<16xf32>
    %21 = vector.shape_cast %20 : vector<16xf32> to vector<16x1xf32>
    %cst_13 = arith.constant 9.99999993E-9 : f32
    %22 = vector.broadcast %cst_13 : f32 to vector<16x1xf32>
    %23 = arith.addf %21, %22 : vector<16x1xf32>
    %24 = tpu.reciprocal %23 {approx = true} : vector<16x1xf32> -> vector<16x1xf32>
    %25 = vector.broadcast %24 : vector<16x1xf32> to vector<16x8xf32>
    %26 = arith.mulf %19, %25 : vector<16x8xf32>
    %27 = vector.shape_cast %26 : vector<16x8xf32> to vector<16x8x1xf32>
    %28 = vector.broadcast %27 : vector<16x8x1xf32> to vector<16x8x64xf32>
    %29 = arith.mulf %0, %28 : vector<16x8x64xf32>
    %cst_14 = arith.constant dense<0.000000e+00> : vector<16x64xf32>
    %30 = vector.multi_reduction <add>, %29, %cst_14 [1] : vector<16x8x64xf32> to vector<16x64xf32>
    %c0_15 = arith.constant 0 : index
    %c0_16 = arith.constant 0 : index
    %31 = vector.load %arg7[%c0_15, %c0_16] : memref<16x64xf32, #tpu.memory_space<vmem>>, vector<16x64xf32>
    tpu.vector_store %arg7[%c0_15, %c0_16], %30 {strides = array<i32>} : memref<16x64xf32, #tpu.memory_space<vmem>>, vector<16x64xf32>,
    return
  }
  func.func @transform_0(%arg0: i32) -> i32 {
    %c0_i32 = arith.constant 0 : i32
    %c0_i32_0 = arith.constant 0 : i32
    return %c0_i32 : i32
  }
  func.func @transform_1(%arg0: i32) -> (i32, i32, i32) {
    %c0_i32 = arith.constant 0 : i32
    %c0_i32_0 = arith.constant 0 : i32
    %c0_i32_1 = arith.constant 0 : i32
    return %arg0, %c0_i32, %c0_i32_0 : i32, i32, i32
  }
  func.func @transform_2(%arg0: i32) -> (i32, i32) {
    %c0_i32 = arith.constant 0 : i32
    %c0_i32_0 = arith.constant 0 : i32
    return %arg0, %c0_i32 : i32, i32
  }
  func.func @transform_3(%arg0: i32) -> (i32, i32) {
    %c0_i32 = arith.constant 0 : i32
    %c0_i32_0 = arith.constant 0 : i32
    %c0_i32_1 = arith.constant 0 : i32
    return %c0_i32, %c0_i32_0 : i32, i32
  }
  func.func @transform_4(%arg0: i32) -> (i32, i32) {
    %c0_i32 = arith.constant 0 : i32
    %c0_i32_0 = arith.constant 0 : i32
    %c0_i32_1 = arith.constant 0 : i32
    return %c0_i32, %c0_i32_0 : i32, i32
  }
  func.func @transform_5(%arg0: i32) -> (i32, i32) {
    %c0_i32 = arith.constant 0 : i32
    %c0_i32_0 = arith.constant 0 : i32
    %c0_i32_1 = arith.constant 0 : i32
    return %c0_i32, %c0_i32_0 : i32, i32
  }
  func.func @transform_6(%arg0: i32) -> (i32, i32) {
    %c0_i32 = arith.constant 0 : i32
    %c0_i32_0 = arith.constant 0 : i32
    return %arg0, %c0_i32 : i32, i32
  }
}

</mosaic_0001>

<bundles_post_ra>
// kernel: tpu_custom_call.1
= control target key start
LH: loop header
LB: loop body
LE: loop exit
PB: predicated region body
PF: predicated region fallthrough
CT: control target
= control target key end

     0   :  { %12 = vsyncpa [#allocation4], 0  ;;  %s1786_s0 = inlined_call_operand.<no memory space> [shape: f32[1], index: 0, kind: input, shape index: {}]   ;;  %s1787_s1 = inlined_call_operand.hbm [shape: f32[16,8,64], index: 1, kind: input, shape index: {}]   ;;  %s1788_s2 = inlined_call_operand.vmem [shape: f32[16,8], index: 2, kind: input, shape index: {}]   ;;  %s1789_s3 = inlined_call_operand.vmem [shape: f32[64,32], index: 3, kind: input, shape index: {}]   ;;  %s1790_s4 = inlined_call_operand.vmem [shape: f32[1,32], index: 4, kind: input, shape index: {}]   ;;  %s1791_s5 = inlined_call_operand.vmem [shape: f32[1,32], index: 5, kind: input, shape index: {}]   ;;  %s1792_s6 = inlined_call_operand.hbm [shape: f32[16,64], index: 6, kind: output, shape index: {}]  }
   0x1   :  { %13 = vsyncpa [#allocation5], 0  ;;  %s1300_s21 = smov [#allocation3]   ;;  %s1252_s25 = scalar_lea.hbm %s1787_s1, 2048 }
   0x2   :  { %s21_s22 = sshll.u32 %s1300_s21, 4  ;;  %p1253_p0 = scmp.ne.s32.totalorder %s1787_s1, %s1252_s25  ;;  %s22_s22 = int_to_ptr.vmem [resolvable:$true] %s21_s22 }
   0x3   :  { %p1256_p1 = scmp.lt.u32.totalorder %s1252_s25, %s1787_s1 }
   0x5   :  { %p1258_p2 = pnand %p1256_p1, %p1253_p0 }
   0x7   :  { %1261 = shalt.err (!%p1258_p2)
}
   0x8   :  { %s1262_s30 = scalar_lea.vmem %s22_s22, 2048  ;;  %p1267_p4 = scmp.lt.s32.totalorder %s22_s22, %s22_s22 }
   0x9   :  { %p1263_p3 = scmp.ne.s32.totalorder %s22_s22, %s1262_s30  ;;  %p1268_p5 = scmp.lt.s32.totalorder %s1262_s30, %s1262_s30 }
   0xb   :  { %p1269_p6 = por %p1268_p5, %p1267_p4 }
   0xd   :  { %p1270_p7 = pnand %p1269_p6, %p1263_p3 }
   0xf   :  { %1273 = shalt.err (!%p1270_p7)
}
  0x10   :  { %s1301_s7 = smov 128   ;;  %s1302_s8 = smov 8  }
  0x11   :  { %27 = dma.hbm_to_vmem [thread:$0]  %s1787_s1, 2048, %s22_s22, [#allocation4], %s1301_s7, %s1301_s7, %s1302_s8  }
  0x12   :  { %1296 = dma.done.wait [#allocation4], 2048  }
  0x13   :  { %1297 = vsyncadd [#allocation4], 4294965248  ;;  %v406_v0 = vlaneseq  ;;  %v55_v1 = vld [vmem:[%s1789_s3] sm:$0xff]  ;;  %v56_v2 = vld [vmem:[%s1789_s3 + $0x8] sm:$0xff]  ;;  %vm70_vm0 = vcmask 523264   ;;  %vm303_vm1 = vcmask 261120  }
  0x14   :  { %v57_v3 = vld [vmem:[%s1789_s3 + $0x10] sm:$0xff]  ;;  %v1153_v4 = vpack.c.bf16 %v56_v2, %v55_v1  ;;  %v58_v5 = vld [vmem:[%s1789_s3 + $0x18] sm:$0xff]  ;;  %v59_v8 = vld [vmem:[%s1789_s3 + $0x20] sm:$0xff]  ;;  %vm680_vm2 = vcmask 1041409   ;;  %vm682_vm3 = vcmask 1042434   ;;  %vm684_vm4 = vcmask 1043459  }
  0x15   :  { %v1368_v6 = vshrl.u32 %v406_v0, 7  ;;  %v1157_v7 = vpack.c.bf16 %v58_v5, %v57_v3  ;;  %v60_v9 = vld [vmem:[%s1789_s3 + $0x28] sm:$0xff]  ;;  %v1376_v10 = vld [vmem:[#allocation3] sm:$0xff]  ;;  %v61_v14 = vld [vmem:[%s1789_s3 + $0x30] sm:$0xff]  ;;  %vm686_vm5 = vcmask 1044484   ;;  %vm688_vm6 = vcmask 1045509  }
  0x16   :  { %1154 = vmatprep.subr.bf16.mxu0 %v1153_v4  ;;  %1169 = vmatprep.subr.bf16.mxu1 %v1153_v4  ;;  %v1378_v11 = vld [vmem:[#allocation3 + $0x40] sm:$0xff]  ;;  %v1161_v12 = vpack.c.bf16 %v60_v9, %v59_v8  ;;  %v62_v15 = vld [vmem:[%s1789_s3 + $0x38] sm:$0xff]  ;;  %v1404_v18 = vld [vmem:[%s1788_s2 + $0x8] sm:$0xff]  ;;  %vm690_vm7 = vcmask 1046534   ;;  %vm692_vm8 = vcmask 1047559   ;;  %vm703_vm9 = vcmask 64512  }
  0x17   :  { %1156 = vmatpush3.bf16.msra.mxu0 %v1153_v4  ;;  %1173 = vmatpush3.bf16.msra.mxu1 %v1153_v4  ;;  %v1381_v13 = vsub.s32 1, %v1368_v6  ;;  %v1394_v16 = vsub.s32 0, %v1368_v6  ;;  %v1399_v17 = vld [vmem:[%s1788_s2] sm:$0xff]  ;;  %v1165_v19 = vpack.c.bf16 %v62_v15, %v61_v14  ;;  %v1413_v23 = vsub.s32 2, %v1368_v6  ;;  %v1417_v25 = vld [vmem:[#allocation3 + $0x8] sm:$0xff]  ;;  %v1424_v28 = vld [vmem:[#allocation3 + $0x10] sm:$0xff] }
  0x18   :  { %1158 = vmatprep.subr.bf16.mxu0 %v1157_v7  ;;  %1170 = vmatprep.subr.bf16.mxu1 %v1157_v7  ;;  %v1419_v26 = vld [vmem:[#allocation3 + $0x48] sm:$0xff]  ;;  %v1422_v27 = vsub.s32 3, %v1368_v6  ;;  %v1426_v29 = vld [vmem:[#allocation3 + $0x50] sm:$0xff]  ;;  %v1438_v32 = vld [vmem:[#allocation3 + $0x18] sm:$0xff]  ;;  %v1445_v34 = vsub.s32 4, %v1368_v6  ;;  %v1468_v41 = vsub.s32 5, %v1368_v6 }
  0x19   :  { %1129 = vmatprep.mubr.msk.f32.mxu0 %vm70_vm0, %v1376_v10  ;;  %1141 = vmatprep.mubr.msk.f32.mxu1 %vm70_vm0, %v1378_v11  ;;  %v416_v20 = vrot.slane %v1399_v17, %v1381_v13  ;;  %v409_v21 = vrot.slane %v1399_v17, %v1394_v16  ;;  %v465_v22 = vrot.slane %v1404_v18, %v1394_v16  ;;  %v1442_v33 = vld [vmem:[#allocation3 + $0x58] sm:$0xff]  ;;  %v1447_v35 = vld [vmem:[#allocation3 + $0x20] sm:$0xff]  ;;  %v1461_v39 = vld [vmem:[#allocation3 + $0x28] sm:$0xff]  ;;  %v1491_v48 = vsub.s32 6, %v1368_v6 }
  0x1a   :  { %v423_v24 = vrot.slane %v1399_v17, %v1413_v23  ;;  %v472_v30 = vrot.slane %v1404_v18, %v1381_v13  ;;  %v430_v31 = vrot.slane %v1399_v17, %v1422_v27  ;;  %v1449_v36 = vld [vmem:[#allocation3 + $0x60] sm:$0xff]  ;;  %v479_v37 = vrot.slane %v1404_v18, %v1413_v23  ;;  %v1465_v40 = vld [vmem:[#allocation3 + $0x68] sm:$0xff]  ;;  %v1470_v42 = vld [vmem:[#allocation3 + $0x30] sm:$0xff] }
  0x1b   :  { %1160 = vmatpush3.bf16.msra.mxu0 %v1157_v7  ;;  %1174 = vmatpush3.bf16.msra.mxu1 %v1157_v7  ;;  %v437_v38 = vrot.slane %v1399_v17, %v1445_v34  ;;  %v1472_v43 = vld [vmem:[#allocation3 + $0x70] sm:$0xff]  ;;  %v486_v44 = vrot.slane %v1404_v18, %v1422_v27  ;;  %v444_v45 = vrot.slane %v1399_v17, %v1468_v41  ;;  %v1484_v46 = vld [vmem:[#allocation3 + $0x38] sm:$0xff]  ;;  %v1508_v53 = vld [vmem:[%s1790_s4] ss:$0 sm:$0xff] }
  0x1c   :  { %1162 = vmatprep.subr.bf16.mxu0 %v1161_v12  ;;  %1171 = vmatprep.subr.bf16.mxu1 %v1161_v12  ;;  %1795 = vst [vmem:[#allocation9_spill] sm:$0xff] %v1484_v46  ;;  %v1488_v47 = vld [vmem:[#allocation3 + $0x78] sm:$0xff]  ;;  %v493_v49 = vrot.slane %v1404_v18, %v1445_v34  ;;  %v451_v50 = vrot.slane %v1399_v17, %v1491_v48 }
  0x1d   :  { %418 = vbcast.lane.b32.xlu1 %v416_v20, 256  ;;  %411 = vbcast.lane.b32.xlu0 %v409_v21, 256  ;;  %1796 = vst [vmem:[#allocation10_spill] sm:$0xff] %v1488_v47  ;;  %v500_v51 = vrot.slane %v1404_v18, %v1468_v41  ;;  %v507_v52 = vrot.slane %v1404_v18, %v1491_v48  ;;  %v1523_v20 = vld [vmem:[%s1791_s5] ss:$0 sm:$0xff] }
  0x1f   :  { %1164 = vmatpush3.bf16.msra.mxu0 %v1161_v12  ;;  %1175 = vmatpush3.bf16.msra.mxu1 %v1161_v12 }
  0x20   :  { %1166 = vmatprep.subr.bf16.mxu0 %v1165_v19  ;;  %1172 = vmatprep.subr.bf16.mxu1 %v1165_v19 }
  0x21   :  { %467 = vbcast.lane.b32.xlu1 %v465_v22, 256  ;;  %425 = vbcast.lane.b32.xlu0 %v423_v24, 256 }
  0x23   :  { %1168 = vmatpush3.bf16.msra.mxu0 %v1165_v19  ;;  %1176 = vmatpush3.bf16.msra.mxu1 %v1165_v19 }
  0x25   :  { %474 = vbcast.lane.b32.xlu1 %v472_v30, 256  ;;  %432 = vbcast.lane.b32.xlu0 %v430_v31, 256 }
  0x26   :  { %1130 = vmatmul.mubr.msk.f32.vlgmr.msra.gmra.mrb[0].mxu0 %vm70_vm0, %v1417_v25  ;;  %1142 = vmatmul.mubr.msk.f32.vlgmr.msra.gmra.mrb[0].mxu1 %vm70_vm0, %v1419_v26 }
  0x27   :  { %1132 = vmatprep.mubr.msk.f32.mxu0 %vm70_vm0, %v1424_v28  ;;  %1144 = vmatprep.mubr.msk.f32.mxu1 %vm70_vm0, %v1426_v29 }
  0x29   :  { %481 = vbcast.lane.b32.xlu1 %v479_v37, 256  ;;  %439 = vbcast.lane.b32.xlu0 %v437_v38, 256 }
  0x2a   :  { %1133 = vmatmul.mubr.msk.f32.gmra.mrb[2].mxu0 %vm70_vm0, %v1438_v32  ;;  %1145 = vmatmul.mubr.msk.f32.gmra.mrb[2].mxu1 %vm70_vm0, %v1442_v33 }
  0x2b   :  { %1135 = vmatprep.mubr.msk.f32.mxu0 %vm70_vm0, %v1447_v35  ;;  %1147 = vmatprep.mubr.msk.f32.mxu1 %vm70_vm0, %v1449_v36 }
  0x2d   :  { %488 = vbcast.lane.b32.xlu1 %v486_v44, 256  ;;  %446 = vbcast.lane.b32.xlu0 %v444_v45, 256 }
  0x2e   :  { %1136 = vmatmul.mubr.msk.f32.gmra.mrb[4].mxu0 %vm70_vm0, %v1461_v39  ;;  %1148 = vmatmul.mubr.msk.f32.gmra.mrb[4].mxu1 %vm70_vm0, %v1465_v40 }
  0x2f   :  { %1138 = vmatprep.mubr.msk.f32.mxu0 %vm70_vm0, %v1470_v42  ;;  %1150 = vmatprep.mubr.msk.f32.mxu1 %vm70_vm0, %v1472_v43 }
  0x31   :  { %495 = vbcast.lane.b32.xlu1 %v493_v49, 256  ;;  %453 = vbcast.lane.b32.xlu0 %v451_v50, 256 }
  0x32   :  { %1139 = vmatmul.mubr.msk.f32.gmra.mrb[6].mxu0 %vm70_vm0, %v1484_v46  ;;  %1151 = vmatmul.mubr.msk.f32.gmra.mrb[6].mxu1 %vm70_vm0, %v1488_v47 }
  0x35   :  { %502 = vbcast.lane.b32.xlu1 %v500_v51, 256 }
  0x39   :  { %509 = vbcast.lane.b32.xlu1 %v507_v52, 256 }
  0xf9   :  { %v1131_v54 = vpop.f32.mrb[0].mxu0  ;;  %v1143_v55 = vpop.f32.mrb[0].mxu1 }
  0xfa   :  { %v191_v56 = vadd.f32 %v1131_v54, %v1508_v53  ;;  %v231_v57 = vadd.f32 %v1143_v55, %v1508_v53  ;;  %v185_v58 = vpop.f32.mrb[1].mxu0  ;;  %v225_v59 = vpop.f32.mrb[1].mxu1 }
  0xfb   :  { %v186_v60 = vadd.f32 %v1508_v53, %v185_v58  ;;  %v226_v61 = vadd.f32 %v1508_v53, %v225_v59 }
  0xfc   :  { %1184 = vtanh.f32 %v191_v56 }
  0xfd   :  { %1186 = vtanh.f32 %v231_v57  ;;  %v1134_v62 = vpop.f32.mrb[2].mxu0  ;;  %v1146_v63 = vpop.f32.mrb[2].mxu1 }
  0xfe   :  { %1188 = vtanh.f32 %v186_v60  ;;  %v201_v1 = vadd.f32 %v1134_v62, %v1508_v53  ;;  %v195_v2 = vpop.f32.mrb[3].mxu0  ;;  %v241_v3 = vadd.f32 %v1146_v63, %v1508_v53  ;;  %v235_v4 = vpop.f32.mrb[3].mxu1 }
  0xff   :  { %1190 = vtanh.f32 %v226_v61  ;;  %v236_v5 = vadd.f32 %v1508_v53, %v235_v4  ;;  %v196_v7 = vadd.f32 %v1508_v53, %v195_v2 }
 0x100   :  { %1192 = vtanh.f32 %v201_v1 }
 0x101   :  { %v1137_v8 = vpop.f32.mrb[4].mxu0  ;;  %v1149_v9 = vpop.f32.mrb[4].mxu1  ;;  %1194 = vtanh.f32 %v241_v3 }
 0x102   :  { %v211_v12 = vadd.f32 %v1137_v8, %v1508_v53  ;;  %v205_v14 = vpop.f32.mrb[5].mxu0  ;;  %v245_v15 = vpop.f32.mrb[5].mxu1  ;;  %1196 = vtanh.f32 %v236_v5  ;;  %v251_v19 = vadd.f32 %v1149_v9, %v1508_v53 }
 0x103   :  { %1198 = vtanh.f32 %v196_v7  ;;  %v246_v44 = vadd.f32 %v1508_v53, %v245_v15  ;;  %v206_v49 = vadd.f32 %v1508_v53, %v205_v14 }
 0x104   :  { %1200 = vtanh.f32 %v211_v12 }
 0x105   :  { %v1140_v21 = vpop.f32.mrb[6].mxu0  ;;  %v1152_v22 = vpop.f32.mrb[6].mxu1  ;;  %1202 = vtanh.f32 %v251_v19 }
 0x106   :  { %v1185_v24 = vpop.eup %1184  ;;  %v215_v30 = vpop.f32.mrb[7].mxu0  ;;  %v221_v58 = vadd.f32 %v1140_v21, %v1508_v53  ;;  %1204 = vtanh.f32 %v246_v44  ;;  %v261_v59 = vadd.f32 %v1152_v22, %v1508_v53 }
 0x107   :  { %v255_v31 = vpop.f32.mrb[7].mxu1  ;;  %v1187_v37 = vpop.eup %1186  ;;  %v288_v38 = vmul.f32 %v1185_v24, %v1523_v20  ;;  %1206 = vtanh.f32 %v206_v49  ;;  %v216_v8 = vadd.f32 %v1508_v53, %v215_v30 }
 0x108   :  { %v1189_v45 = vpop.eup %1188  ;;  %v296_v50 = vmul.f32 %v1187_v37, %v1523_v20  ;;  %1208 = vtanh.f32 %v221_v58  ;;  %v256_v5 = vadd.f32 %v1508_v53, %v255_v31 }
 0x109   :  { %v1191_v51 = vpop.eup %1190  ;;  %v307_v52 = vsel %vm303_vm1, %v288_v38, 0.0  ;;  %v287_v54 = vmul.f32 %v1189_v45, %v1523_v20  ;;  %1210 = vtanh.f32 %v261_v59 }
 0x10a   :  { %v1193_v55 = vpop.eup %1192  ;;  %v331_v56 = vsel %vm303_vm1, %v296_v50, 0.0  ;;  %308 = vadd.xlane.f32.xlu0 %v307_v52  ;;  %v295_v57 = vmul.f32 %v1191_v51, %v1523_v20  ;;  %1212 = vtanh.f32 %v256_v5  ;;  %v412_v5 = vpop.permute.xlu0 %411 }
 0x10b   :  { %332 = vadd.xlane.f32.xlu1 %v331_v56  ;;  %v290_v60 = vmul.f32 %v1193_v55, %v1523_v20  ;;  %v1195_v61 = vpop.eup %1194  ;;  %v304_v1 = vsel %vm303_vm1, %v287_v54, 0.0  ;;  %1214 = vtanh.f32 %v216_v8 }
 0x10c   :  { %v328_v62 = vsel %vm303_vm1, %v295_v57, 0.0  ;;  %v1197_v63 = vpop.eup %1196  ;;  %v298_v2 = vmul.f32 %v1195_v61, %v1523_v20 }
 0x10d   :  { %v1199_v3 = vpop.eup %1198  ;;  %v313_v4 = vsel %vm303_vm1, %v290_v60, 0.0  ;;  %v297_v12 = vmul.f32 %v1197_v63, %v1523_v20  ;;  %v1303_v63 = vmov 0  }
 0x10e   :  { %305 = vadd.xlane.f32.xlu0 %v304_v1  ;;  %v1201_v7 = vpop.eup %1200  ;;  %v337_v9 = vsel %vm303_vm1, %v298_v2, 0.0  ;;  %v289_v15 = vmul.f32 %v1199_v3, %v1523_v20  ;;  %1182 = vset.pattern.permute.xlu1 %v1303_v63  ;;  %v1564_v1 = vsub.s32 7, %v1368_v6  ;;  %v419_v3 = vpop.permute.xlu1 %418 }
 0x10f   :  { %329 = vadd.xlane.f32.xlu1 %v328_v62  ;;  %v1203_v14 = vpop.eup %1202  ;;  %v292_v19 = vmul.f32 %v1201_v7, %v1523_v20  ;;  %v334_v21 = vsel %vm303_vm1, %v297_v12, 0.0  ;;  %1183 = vset.pattern.permute.xlu0 %v1303_v63  ;;  %v1572_v8 = vpop.permute.xlu0 %425 }
 0x110   :  { %v300_v22 = vmul.f32 %v1203_v14, %v1523_v20  ;;  %v1205_v24 = vpop.eup %1204  ;;  %v310_v53 = vsel %vm303_vm1, %v289_v15, 0.0  ;;  %v514_v2 = vrot.slane %v1404_v18, %v1564_v1 }
 0x111   :  { %v1207_v30 = vpop.eup %1206  ;;  %v319_v31 = vsel %vm303_vm1, %v292_v19, 0.0  ;;  %v299_v44 = vmul.f32 %v1205_v24, %v1523_v20  ;;  %v1595_v24 = vstv %s1786_s0  ;;  %s1304_s0 = smov [#allocation6]  }
 0x112   :  { %314 = vadd.xlane.f32.xlu0 %v313_v4  ;;  %v1209_v37 = vpop.eup %1208  ;;  %v343_v38 = vsel %vm303_vm1, %v300_v22, 0.0  ;;  %v291_v49 = vmul.f32 %v1207_v30, %v1523_v20  ;;  %v1570_v4 = vpop.permute.xlu1 %467  ;;  %s1059_s10 = sshll.u32 %s1304_s0, 4  ;;  %s1060_s10 = int_to_ptr.vmem [resolvable:$true] %s1059_s10 }
 0x113   :  { %338 = vadd.xlane.f32.xlu1 %v337_v9  ;;  %v1211_v45 = vpop.eup %1210  ;;  %v294_v50 = vmul.f32 %v1209_v37, %v1523_v20  ;;  %v340_v51 = vsel %vm303_vm1, %v299_v44, 0.0  ;;  %v1576_v12 = vpop.permute.xlu0 %432  ;;  %s1274_s11 = scalar_lea.vmem %s1060_s10, 256  ;;  %p1279_p9 = scmp.lt.s32.totalorder %s1060_s10, %s1060_s10 }
 0x114   :  { %v302_v52 = vmul.f32 %v1211_v45, %v1523_v20  ;;  %v1213_v54 = vpop.eup %1212  ;;  %v316_v55 = vsel %vm303_vm1, %v291_v49, 0.0  ;;  %p1275_p8 = scmp.ne.s32.totalorder %s1060_s10, %s1274_s11  ;;  %p1280_p10 = scmp.lt.s32.totalorder %s1274_s11, %s1274_s11 }
 0x115   :  { %v1215_v56 = vpop.eup %1214  ;;  %v325_v57 = vsel %vm303_vm1, %v294_v50, 0.0  ;;  %v301_v59 = vmul.f32 %v1213_v54, %v1523_v20 }
 0x116   :  { %311 = vadd.xlane.f32.xlu0 %v310_v53  ;;  %v349_v58 = vsel %vm303_vm1, %v302_v52, 0.0  ;;  %v293_v60 = vmul.f32 %v1215_v56, %v1523_v20  ;;  %v458_v20 = vrot.slane %v1399_v17, %v1564_v1  ;;  %v475_v7 = vpop.permute.xlu1 %474  ;;  %p1281_p11 = por %p1280_p10, %p1279_p9 }
 0x117   :  { %335 = vadd.xlane.f32.xlu1 %v334_v21  ;;  %v346_v61 = vsel %vm303_vm1, %v301_v59, 0.0  ;;  %v1580_v15 = vpop.permute.xlu0 %439 }
 0x118   :  { %v322_v62 = vsel %vm303_vm1, %v293_v60, 0.0  ;;  %p1282_p12 = pnand %p1281_p11, %p1275_p8 }
 0x11a   :  { %320 = vadd.xlane.f32.xlu0 %v319_v31  ;;  %v1574_v9 = vpop.permute.xlu1 %481 }
 0x11b   :  { %344 = vadd.xlane.f32.xlu1 %v343_v38  ;;  %v1584_v17 = vpop.permute.xlu0 %446 }
 0x11e   :  { %317 = vadd.xlane.f32.xlu0 %v316_v55  ;;  %v1578_v14 = vpop.permute.xlu1 %488 }
 0x11f   :  { %341 = vadd.xlane.f32.xlu1 %v340_v51  ;;  %v1588_v21 = vpop.permute.xlu0 %453 }
 0x122   :  { %326 = vadd.xlane.f32.xlu0 %v325_v57  ;;  %v1582_v18 = vpop.permute.xlu1 %495 }
 0x123   :  { %350 = vadd.xlane.f32.xlu1 %v349_v58 }
 0x126   :  { %323 = vadd.xlane.f32.xlu0 %v322_v62  ;;  %v1586_v19 = vpop.permute.xlu1 %502 }
 0x127   :  { %347 = vadd.xlane.f32.xlu1 %v346_v61 }
 0x12a   :  { %v1590_v22 = vpop.permute.xlu1 %509 }
 0x138   :  { %516 = vbcast.lane.b32.xlu1 %v514_v2, 256 }
 0x13c   :  { %460 = vbcast.lane.b32.xlu0 %v458_v20, 256 }
 0x197   :  { %v309_v53 = vpop.xlane.xlu0 %308 }
 0x198   :  { %v333_v30 = vpop.xlane.xlu1 %332  ;;  %v355_v31 = vadd.f32 %v1595_v24, %v309_v53 }
 0x199   :  { %v363_v37 = vadd.f32 %v1595_v24, %v333_v30 }
 0x19a   :  { %v372_v38 = vmul.f32 1.442695, %v355_v31 }
 0x19b   :  { %v388_v44 = vmul.f32 1.442695, %v363_v37  ;;  %v306_v45 = vpop.xlane.xlu0 %305 }
 0x19c   :  { %1216 = vpow2.f32 %v372_v38  ;;  %v330_v49 = vpop.xlane.xlu1 %329  ;;  %v354_v50 = vadd.f32 %v1595_v24, %v306_v45 }
 0x19d   :  { %1218 = vpow2.f32 %v388_v44  ;;  %v362_v51 = vadd.f32 %v1595_v24, %v330_v49 }
 0x19e   :  { %v370_v52 = vmul.f32 1.442695, %v354_v50 }
 0x19f   :  { %v386_v54 = vmul.f32 1.442695, %v362_v51  ;;  %v315_v55 = vpop.xlane.xlu0 %314 }
 0x1a0   :  { %1220 = vpow2.f32 %v370_v52  ;;  %v339_v56 = vpop.xlane.xlu1 %338  ;;  %v357_v57 = vadd.f32 %v1595_v24, %v315_v55 }
 0x1a1   :  { %1222 = vpow2.f32 %v386_v54  ;;  %v365_v58 = vadd.f32 %v1595_v24, %v339_v56 }
 0x1a2   :  { %v376_v59 = vmul.f32 1.442695, %v357_v57 }
 0x1a3   :  { %v392_v60 = vmul.f32 1.442695, %v365_v58  ;;  %v312_v61 = vpop.xlane.xlu0 %311 }
 0x1a4   :  { %1224 = vpow2.f32 %v376_v59  ;;  %v336_v62 = vpop.xlane.xlu1 %335  ;;  %v356_v63 = vadd.f32 %v1595_v24, %v312_v61 }
 0x1a5   :  { %1226 = vpow2.f32 %v392_v60  ;;  %v364_v2 = vadd.f32 %v1595_v24, %v336_v62 }
 0x1a6   :  { %v1217_v20 = vpop.eup %1216  ;;  %v374_v53 = vmul.f32 1.442695, %v356_v63 }
 0x1a7   :  { %v1219_v30 = vpop.eup %1218  ;;  %v390_v31 = vmul.f32 1.442695, %v364_v2  ;;  %v321_v37 = vpop.xlane.xlu0 %320  ;;  %v1605_v38 = vmul.f32 %v1217_v20, %v419_v3 }
 0x1a8   :  { %1228 = vpow2.f32 %v374_v53  ;;  %v345_v44 = vpop.xlane.xlu1 %344  ;;  %v359_v45 = vadd.f32 %v1595_v24, %v321_v37  ;;  %v1608_v49 = vmul.f32 %v1219_v30, %v475_v7 }
 0x1a9   :  { %1230 = vpow2.f32 %v390_v31  ;;  %v367_v50 = vadd.f32 %v1595_v24, %v345_v44  ;;  %570 = vperm.xlu1 %1182, %v1605_v38  }
 0x1aa   :  { %v1221_v51 = vpop.eup %1220  ;;  %v380_v52 = vmul.f32 1.442695, %v359_v45  ;;  %594 = vperm.xlu0 %1183, %v1608_v49  }
 0x1ab   :  { %v1223_v54 = vpop.eup %1222  ;;  %v396_v55 = vmul.f32 1.442695, %v367_v50  ;;  %v318_v56 = vpop.xlane.xlu0 %317  ;;  %v1613_v3 = vmul.f32 %v1221_v51, %v412_v5 }
 0x1ac   :  { %1232 = vpow2.f32 %v380_v52  ;;  %v342_v57 = vpop.xlane.xlu1 %341  ;;  %v358_v58 = vadd.f32 %v1595_v24, %v318_v56  ;;  %v1617_v7 = vmul.f32 %v1223_v54, %v1570_v4 }
 0x1ad   :  { %1234 = vpow2.f32 %v396_v55  ;;  %v366_v59 = vadd.f32 %v1595_v24, %v342_v57 }
 0x1ae   :  { %v1225_v60 = vpop.eup %1224  ;;  %v378_v61 = vmul.f32 1.442695, %v358_v58  ;;  %591 = vperm.xlu1 %1182, %v1617_v7   ;;  %567 = vperm.xlu0 %1183, %v1613_v3  }
 0x1af   :  { %v1227_v62 = vpop.eup %1226  ;;  %v394_v63 = vmul.f32 1.442695, %v366_v59  ;;  %v327_v5 = vpop.xlane.xlu0 %326  ;;  %v1623_v2 = vmul.f32 %v1225_v60, %v1576_v12 }
 0x1b0   :  { %1236 = vpow2.f32 %v378_v61  ;;  %v351_v20 = vpop.xlane.xlu1 %350  ;;  %v1626_v4 = vmul.f32 %v1227_v62, %v1578_v14  ;;  %v361_v30 = vadd.f32 %v1595_v24, %v327_v5 }
 0x1b1   :  { %1238 = vpow2.f32 %v394_v63  ;;  %v369_v37 = vadd.f32 %v1595_v24, %v351_v20 }
 0x1b2   :  { %v1229_v53 = vpop.eup %1228  ;;  %600 = vperm.xlu0 %1183, %v1626_v4   ;;  %576 = vperm.xlu1 %1182, %v1623_v2   ;;  %v384_v54 = vmul.f32 1.442695, %v361_v30 }
 0x1b3   :  { %v1231_v31 = vpop.eup %1230  ;;  %v324_v44 = vpop.xlane.xlu0 %323  ;;  %v1633_v12 = vmul.f32 %v1229_v53, %v1572_v8  ;;  %v400_v57 = vmul.f32 1.442695, %v369_v37 }
 0x1b4   :  { %v348_v45 = vpop.xlane.xlu1 %347  ;;  %v360_v50 = vadd.f32 %v1595_v24, %v324_v44  ;;  %v1637_v14 = vmul.f32 %v1231_v31, %v1574_v9 }
 0x1b5   :  { %v368_v51 = vadd.f32 %v1595_v24, %v348_v45 }
 0x1b6   :  { %v1233_v52 = vpop.eup %1232  ;;  %v382_v55 = vmul.f32 1.442695, %v360_v50  ;;  %597 = vperm.xlu0 %1183, %v1637_v14   ;;  %573 = vperm.xlu1 %1182, %v1633_v12  }
 0x1b7   :  { %v1235_v56 = vpop.eup %1234  ;;  %v398_v58 = vmul.f32 1.442695, %v368_v51  ;;  %v1643_v8 = vmul.f32 %v1233_v52, %v1584_v17  ;;  %v461_v5 = vpop.permute.xlu0 %460  ;;  %v615_v52 = vand.u32 127, %v406_v0 }
 0x1b8   :  { %1240 = vpow2.f32 %v382_v55  ;;  %v1646_v59 = vmul.f32 %v1235_v56, %v1586_v19 }
 0x1b9   :  { %1242 = vpow2.f32 %v398_v58  ;;  %v618_v56 = vsub.s32 %v615_v52, %v1368_v6 }
 0x1ba   :  { %v1237_v9 = vpop.eup %1236  ;;  %1244 = vpow2.f32 %v384_v54  ;;  %606 = vperm.xlu0 %1183, %v1646_v59   ;;  %582 = vperm.xlu1 %1182, %v1643_v8  }
 0x1bb   :  { %v1239_v24 = vpop.eup %1238  ;;  %1246 = vpow2.f32 %v400_v57  ;;  %v1651_v60 = vmul.f32 %v1237_v9, %v1580_v15  ;;  %v517_v15 = vpop.permute.xlu1 %516 }
 0x1bc   :  { %v1654_v61 = vmul.f32 %v1239_v24, %v1582_v18 }
 0x1be   :  { %603 = vperm.xlu0 %1183, %v1654_v61   ;;  %579 = vperm.xlu1 %1182, %v1651_v60  }
 0x1c2   :  { %v1241_v17 = vpop.eup %1240 }
 0x1c3   :  { %v1243_v19 = vpop.eup %1242  ;;  %v1659_v62 = vmul.f32 %v1241_v17, %v1588_v21 }
 0x1c4   :  { %v1245_v63 = vpop.eup %1244  ;;  %v1662_v20 = vmul.f32 %v1243_v19, %v1590_v22 }
 0x1c5   :  { %v1247_v53 = vpop.eup %1246  ;;  %585 = vperm.xlu1 %1182, %v1659_v62   ;;  %v1666_v18 = vmul.f32 %v1245_v63, %v461_v5 }
 0x1c6   :  { %609 = vperm.xlu0 %1183, %v1662_v20   ;;  %v1668_v30 = vmul.f32 %v1247_v53, %v517_v15 }
 0x1c9   :  { %588 = vperm.xlu1 %1182, %v1666_v18  }
 0x1ca   :  { %612 = vperm.xlu0 %1183, %v1668_v30  }
 0x228   :  { %v571_v21 = vpop.permute.xlu1 %570 }
 0x229   :  { %v595_v31 = vpop.permute.xlu0 %594  ;;  %v623_v24 = vrot.slane %v571_v21, %v618_v56 }
 0x22a   :  { %v655_v63 = vrot.slane %v595_v31, %v618_v56 }
 0x22d   :  { %v592_v37 = vpop.permute.xlu1 %591  ;;  %v568_v44 = vpop.permute.xlu0 %567 }
 0x22e   :  { %v619_v57 = vrot.slane %v568_v44, %v618_v56  ;;  %v651_v58 = vrot.slane %v592_v37, %v618_v56 }
 0x230   :  { %v681_v53 = vsel %vm680_vm2, %v623_v24, %v619_v57  ;;  %v694_v15 = vsel %vm680_vm2, %v655_v63, %v651_v58 }
 0x231   :  { %v577_v22 = vpop.permute.xlu1 %576  ;;  %v601_v45 = vpop.permute.xlu0 %600 }
 0x232   :  { %v631_v46 = vrot.slane %v577_v22, %v618_v56  ;;  %v663_v44 = vrot.slane %v601_v45, %v618_v56 }
 0x235   :  { %v574_v50 = vpop.permute.xlu1 %573  ;;  %v598_v51 = vpop.permute.xlu0 %597 }
 0x236   :  { %v627_v9 = vrot.slane %v574_v50, %v618_v56  ;;  %v659_v17 = vrot.slane %v598_v51, %v618_v56 }
 0x238   :  { %v683_v0 = vsel %vm682_vm3, %v627_v9, %v681_v53  ;;  %v695_v6 = vsel %vm682_vm3, %v659_v17, %v694_v15 }
 0x239   :  { %v583_v54 = vpop.permute.xlu1 %582  ;;  %v607_v55 = vpop.permute.xlu0 %606  ;;  %v685_v50 = vsel %vm684_vm4, %v631_v46, %v683_v0  ;;  %v696_v52 = vsel %vm684_vm4, %v663_v44, %v695_v6 }
 0x23a   :  { %v639_v58 = vrot.slane %v583_v54, %v618_v56  ;;  %v671_v22 = vrot.slane %v607_v55, %v618_v56 }
 0x23d   :  { %v580_v19 = vpop.permute.xlu1 %579  ;;  %v604_v5 = vpop.permute.xlu0 %603 }
 0x23e   :  { %v635_v47 = vrot.slane %v580_v19, %v618_v56  ;;  %v667_v37 = vrot.slane %v604_v5, %v618_v56 }
 0x240   :  { %v687_v31 = vsel %vm686_vm5, %v635_v47, %v685_v50  ;;  %v697_v9 = vsel %vm686_vm5, %v667_v37, %v696_v52 }
 0x241   :  { %v689_v63 = vsel %vm688_vm6, %v639_v58, %v687_v31  ;;  %v698_v5 = vsel %vm688_vm6, %v671_v22, %v697_v9 }
 0x244   :  { %v586_v21 = vpop.permute.xlu1 %585 }
 0x245   :  { %v610_v51 = vpop.permute.xlu0 %609  ;;  %v643_v57 = vrot.slane %v586_v21, %v618_v56 }
 0x246   :  { %v675_v24 = vrot.slane %v610_v51, %v618_v56 }
 0x247   :  { %v691_v47 = vsel %vm690_vm7, %v643_v57, %v689_v63 }
 0x248   :  { %v589_v17 = vpop.permute.xlu1 %588  ;;  %v699_v54 = vsel %vm690_vm7, %v675_v24, %v698_v5 }
 0x249   :  { %v647_v19 = vrot.slane %v589_v17, %v618_v56  ;;  %v613_v45 = vpop.permute.xlu0 %612 }
 0x24a   :  { %v679_v46 = vrot.slane %v613_v45, %v618_v56 }
 0x24b   :  { %v693_v53 = vsel %vm692_vm8, %v647_v19, %v691_v47 }
 0x24c   :  { %v704_v15 = vsel %vm703_vm9, %v693_v53, 0.0  ;;  %v700_v0 = vsel %vm692_vm8, %v679_v46, %v699_v54 }
 0x24d   :  { %705 = vadd.xlane.f32.xlu1 %v704_v15  ;;  %v707_v55 = vsel %vm703_vm9, %v700_v0, 0.0 }
 0x24e   :  { %708 = vadd.xlane.f32.xlu0 %v707_v55 }
 0x2da   :  { %v706_v6 = vpop.xlane.xlu1 %705 }
 0x2db   :  { %v710_v37 = vadd.f32 1e-08, %v706_v6  ;;  %v709_v44 = vpop.xlane.xlu0 %708 }
 0x2dc   :  { %v711_v21 = vadd.f32 1e-08, %v709_v44 }
 0x2dd   :  { %1248 = vrcp.f32 %v710_v37 }
 0x2de   :  { %1250 = vrcp.f32 %v711_v21 }
 0x2e7   :  { %v1249_v56 = vpop.eup %1248 }
 0x2e8   :  { %v1251_v50 = vpop.eup %1250  ;;  %v723_v51 = vrot.slane %v1249_v56, %v1381_v13  ;;  %v719_v31 = vrot.slane %v1249_v56, %v1394_v16  ;;  %v727_v19 = vrot.slane %v1249_v56, %v1413_v23 }
 0x2e9   :  { %v755_v58 = vrot.slane %v1251_v50, %v1381_v13  ;;  %v751_v9 = vrot.slane %v1251_v50, %v1394_v16  ;;  %v759_v17 = vrot.slane %v1251_v50, %v1413_v23  ;;  %v763_v13 = vrot.slane %v1251_v50, %v1422_v27 }
 0x2ea   :  { %v797_v52 = vmul.f32 %v723_v51, %v1605_v38  ;;  %v796_v57 = vmul.f32 %v719_v31, %v1613_v3  ;;  %v798_v3 = vmul.f32 %v727_v19, %v1633_v12  ;;  %v731_v16 = vrot.slane %v1249_v56, %v1422_v27 }
 0x2eb   :  { %v805_v24 = vmul.f32 %v755_v58, %v1608_v49  ;;  %v804_v22 = vmul.f32 %v751_v9, %v1617_v7  ;;  %v806_v38 = vmul.f32 %v759_v17, %v1637_v14  ;;  %v807_v49 = vmul.f32 %v763_v13, %v1626_v4 }
 0x2ec   :  { %819 = vperm.xlu1 %1182, %v797_v52   ;;  %814 = vperm.xlu0 %1183, %v796_v57   ;;  %v799_v7 = vmul.f32 %v731_v16, %v1623_v2  ;;  %v767_v45 = vrot.slane %v1251_v50, %v1445_v34  ;;  %v735_v23 = vrot.slane %v1249_v56, %v1445_v34 }
 0x2ed   :  { %v771_v63 = vrot.slane %v1251_v50, %v1468_v41  ;;  %v739_v27 = vrot.slane %v1249_v56, %v1468_v41  ;;  %v775_v46 = vrot.slane %v1251_v50, %v1491_v48  ;;  %v743_v34 = vrot.slane %v1249_v56, %v1491_v48 }
 0x2ee   :  { %v808_v14 = vmul.f32 %v767_v45, %v1654_v61  ;;  %v800_v12 = vmul.f32 %v735_v23, %v1651_v60  ;;  %v779_v47 = vrot.slane %v1251_v50, %v1564_v1  ;;  %v747_v41 = vrot.slane %v1249_v56, %v1564_v1 }
 0x2ef   :  { %v809_v4 = vmul.f32 %v771_v63, %v1646_v59  ;;  %v801_v2 = vmul.f32 %v739_v27, %v1643_v8  ;;  %v810_v61 = vmul.f32 %v775_v46, %v1662_v20  ;;  %v802_v60 = vmul.f32 %v743_v34, %v1659_v62 }
 0x2f0   :  { %859 = vperm.xlu0 %1183, %v805_v24   ;;  %854 = vperm.xlu1 %1182, %v804_v22   ;;  %v811_v59 = vmul.f32 %v779_v47, %v1668_v30  ;;  %v803_v8 = vmul.f32 %v747_v41, %v1666_v18 }
 0x2f4   :  { %864 = vperm.xlu0 %1183, %v806_v38   ;;  %824 = vperm.xlu1 %1182, %v798_v3  }
 0x2f8   :  { %869 = vperm.xlu0 %1183, %v807_v49   ;;  %829 = vperm.xlu1 %1182, %v799_v7  }
 0x2fc   :  { %874 = vperm.xlu0 %1183, %v808_v14   ;;  %834 = vperm.xlu1 %1182, %v800_v12  }
 0x300   :  { %879 = vperm.xlu0 %1183, %v809_v4   ;;  %839 = vperm.xlu1 %1182, %v801_v2  }
 0x304   :  { %884 = vperm.xlu0 %1183, %v810_v61   ;;  %844 = vperm.xlu1 %1182, %v802_v60  }
 0x308   :  { %889 = vperm.xlu0 %1183, %v811_v59   ;;  %849 = vperm.xlu1 %1182, %v803_v8  }
 0x36b   :  { %v820_v5 = vpop.permute.xlu1 %819  ;;  %v815_v48 = vpop.permute.xlu0 %814 }
 0x36c   :  { %v893_v53 = vmul.f32 %v820_v5, %v1417_v25  ;;  %v892_v20 = vmul.f32 %v815_v48, %v1376_v10 }
 0x36e   :  { %v915_v62 = vsel %vm70_vm0, %v893_v53, 0.0  ;;  %v908_v54 = vsel %vm70_vm0, %v892_v20, 0.0 }
 0x36f   :  { %v916_v15 = vrot.slane %v915_v62, 4  ;;  %v909_v1 = vrot.slane %v908_v54, 4  ;;  %v855_v0 = vpop.permute.xlu1 %854  ;;  %v860_v55 = vpop.permute.xlu0 %859 }
 0x370   :  { %v900_v30 = vmul.f32 %v855_v0, %v1378_v11  ;;  %v901_v18 = vmul.f32 %v860_v55, %v1419_v26 }
 0x371   :  { %v917_v6 = vadd.f32 %v916_v15, %v915_v62  ;;  %v910_v37 = vadd.f32 %v909_v1, %v908_v54 }
 0x372   :  { %v964_v44 = vsel %vm70_vm0, %v900_v30, 0.0  ;;  %v971_v25 = vsel %vm70_vm0, %v901_v18, 0.0 }
 0x373   :  { %v918_v21 = vrot.slane %v917_v6, 2  ;;  %v965_v10 = vrot.slane %v964_v44, 4  ;;  %v972_v56 = vrot.slane %v971_v25, 4  ;;  %v825_v50 = vpop.permute.xlu1 %824  ;;  %v865_v51 = vpop.permute.xlu0 %864  ;;  %v911_v31 = vrot.slane %v910_v37, 2 }
 0x374   :  { %v894_v52 = vmul.f32 %v825_v50, %v1424_v28  ;;  %v902_v58 = vmul.f32 %v865_v51, %v1426_v29 }
 0x375   :  { %v966_v57 = vadd.f32 %v965_v10, %v964_v44  ;;  %v973_v11 = vadd.f32 %v972_v56, %v971_v25  ;;  %v919_v9 = vadd.f32 %v918_v21, %v917_v6  ;;  %v912_v22 = vadd.f32 %v911_v31, %v910_v37 }
 0x376   :  { %v922_v17 = vsel %vm70_vm0, %v894_v52, 0.0  ;;  %v978_v13 = vsel %vm70_vm0, %v902_v58, 0.0 }
 0x377   :  { %v830_v26 = vpop.permute.xlu1 %829  ;;  %v870_v24 = vpop.permute.xlu0 %869  ;;  %v967_v3 = vrot.slane %v966_v57, 2  ;;  %v974_v16 = vrot.slane %v973_v11, 2  ;;  %v920_v29 = vrot.slane %v919_v9, 1  ;;  %v923_v7 = vrot.slane %v922_v17, 4 }
 0x378   :  { %v895_v19 = vmul.f32 %v830_v26, %v1438_v32  ;;  %v903_v38 = vmul.f32 %v870_v24, %v1442_v33  ;;  %v913_v14 = vrot.slane %v912_v22, 1  ;;  %v979_v12 = vrot.slane %v978_v13, 4 }
 0x379   :  { %v968_v32 = vadd.f32 %v967_v3, %v966_v57  ;;  %v975_v2 = vadd.f32 %v974_v16, %v973_v11  ;;  %v921_v34 = vadd.f32 %v920_v29, %v919_v9  ;;  %v924_v61 = vadd.f32 %v923_v7, %v922_v17  ;;  %v1798_v29 = vld [vmem:[#allocation10_spill] sm:$0xff] }
 0x37a   :  { %v929_v28 = vsel %vm70_vm0, %v895_v19, 0.0  ;;  %v985_v49 = vsel %vm70_vm0, %v903_v38, 0.0  ;;  %v914_v8 = vadd.f32 %v913_v14, %v912_v22  ;;  %v980_v5 = vadd.f32 %v979_v12, %v978_v13 }
 0x37b   :  { %v835_v45 = vpop.permute.xlu1 %834  ;;  %v875_v23 = vpop.permute.xlu0 %874  ;;  %v930_v63 = vrot.slane %v929_v28, 4  ;;  %v986_v4 = vrot.slane %v985_v49, 4  ;;  %v969_v20 = vrot.slane %v968_v32, 1  ;;  %v976_v54 = vrot.slane %v975_v2, 1 }
 0x37c   :  { %v896_v27 = vmul.f32 %v835_v45, %v1447_v35  ;;  %v904_v33 = vmul.f32 %v875_v23, %v1449_v36  ;;  %v925_v1 = vrot.slane %v924_v61, 2  ;;  %v1745_v37 = vsel %vm680_vm2, %v921_v34, %v914_v8 }
 0x37d   :  { %v931_v48 = vadd.f32 %v930_v63, %v929_v28  ;;  %v987_v35 = vadd.f32 %v986_v4, %v985_v49  ;;  %v981_v44 = vrot.slane %v980_v5, 2  ;;  %v970_v21 = vadd.f32 %v969_v20, %v968_v32  ;;  %v1797_v49 = vld [vmem:[#allocation9_spill] sm:$0xff] }
 0x37e   :  { %v936_v46 = vsel %vm70_vm0, %v896_v27, 0.0  ;;  %v992_v47 = vsel %vm70_vm0, %v904_v33, 0.0  ;;  %v926_v52 = vadd.f32 %v925_v1, %v924_v61 }
 0x37f   :  { %v937_v60 = vrot.slane %v936_v46, 4  ;;  %v840_v41 = vpop.permute.xlu1 %839  ;;  %v880_v59 = vpop.permute.xlu0 %879  ;;  %v993_v53 = vrot.slane %v992_v47, 4  ;;  %v932_v25 = vrot.slane %v931_v48, 2  ;;  %v988_v10 = vrot.slane %v987_v35, 2 }
 0x380   :  { %v897_v62 = vmul.f32 %v840_v41, %v1461_v39  ;;  %v905_v36 = vmul.f32 %v880_v59, %v1465_v40  ;;  %v977_v40 = vadd.f32 %v976_v54, %v975_v2  ;;  %v982_v24 = vadd.f32 %v981_v44, %v980_v5 }
 0x381   :  { %v938_v15 = vadd.f32 %v937_v60, %v936_v46  ;;  %v994_v0 = vadd.f32 %v993_v53, %v992_v47  ;;  %v933_v22 = vadd.f32 %v932_v25, %v931_v48  ;;  %v989_v38 = vadd.f32 %v988_v10, %v987_v35 }
 0x382   :  { %v943_v55 = vsel %vm70_vm0, %v897_v62, 0.0  ;;  %v999_v30 = vsel %vm70_vm0, %v905_v36, 0.0  ;;  %v927_v45 = vrot.slane %v926_v52, 1  ;;  %v983_v33 = vrot.slane %v982_v24, 1 }
 0x383   :  { %v845_v18 = vpop.permute.xlu1 %844  ;;  %v885_v6 = vpop.permute.xlu0 %884  ;;  %v944_v39 = vrot.slane %v943_v55, 4  ;;  %v1000_v56 = vrot.slane %v999_v30, 4  ;;  %v939_v50 = vrot.slane %v938_v15, 2  ;;  %v995_v57 = vrot.slane %v994_v0, 2 }
 0x384   :  { %v898_v51 = vmul.f32 %v845_v18, %v1470_v42  ;;  %v906_v31 = vmul.f32 %v885_v6, %v1472_v43  ;;  %v934_v2 = vrot.slane %v933_v22, 1  ;;  %v990_v61 = vrot.slane %v989_v38, 1 }
 0x385   :  { %v945_v58 = vadd.f32 %v944_v39, %v943_v55  ;;  %v1001_v11 = vadd.f32 %v1000_v56, %v999_v30  ;;  %v940_v28 = vadd.f32 %v939_v50, %v938_v15  ;;  %v996_v23 = vadd.f32 %v995_v57, %v994_v0 }
 0x386   :  { %v950_v17 = vsel %vm70_vm0, %v898_v51, 0.0  ;;  %v1006_v19 = vsel %vm70_vm0, %v906_v31, 0.0  ;;  %v928_v53 = vadd.f32 %v927_v45, %v926_v52  ;;  %v984_v36 = vadd.f32 %v983_v33, %v982_v24 }
 0x387   :  { %v850_v9 = vpop.permute.xlu1 %849  ;;  %v890_v26 = vpop.permute.xlu0 %889  ;;  %v946_v3 = vrot.slane %v945_v58, 2  ;;  %v1002_v13 = vrot.slane %v1001_v11, 2  ;;  %v951_v16 = vrot.slane %v950_v17, 4  ;;  %v1007_v42 = vrot.slane %v1006_v19, 4 }
 0x388   :  { %v899_v43 = vmul.f32 %v850_v9, %v1797_v49  ;;  %v907_v7 = vmul.f32 %v890_v26, %v1798_v29  ;;  %v941_v60 = vrot.slane %v940_v28, 1  ;;  %v997_v59 = vrot.slane %v996_v23, 1 }
 0x389   :  { %v947_v14 = vadd.f32 %v946_v3, %v945_v58  ;;  %v952_v12 = vadd.f32 %v951_v16, %v950_v17  ;;  %v1003_v63 = vadd.f32 %v1002_v13, %v1001_v11  ;;  %v1008_v27 = vadd.f32 %v1007_v42, %v1006_v19 }
 0x38a   :  { %v957_v32 = vsel %vm70_vm0, %v899_v43, 0.0  ;;  %v1013_v4 = vsel %vm70_vm0, %v907_v7, 0.0  ;;  %v935_v54 = vadd.f32 %v934_v2, %v933_v22  ;;  %v991_v0 = vadd.f32 %v990_v61, %v989_v38 }
 0x38b   :  { %v953_v46 = vrot.slane %v952_v12, 2  ;;  %v958_v34 = vrot.slane %v957_v32, 4  ;;  %v1009_v47 = vrot.slane %v1008_v27, 2  ;;  %v1014_v41 = vrot.slane %v1013_v4, 4 }
 0x38c   :  { %v948_v8 = vrot.slane %v947_v14, 1  ;;  %v1004_v20 = vrot.slane %v1003_v63, 1  ;;  %v942_v55 = vadd.f32 %v941_v60, %v940_v28  ;;  %v1043_v6 = vsel %vm680_vm2, %v977_v40, %v970_v21 }
 0x38d   :  { %v954_v5 = vadd.f32 %v953_v46, %v952_v12  ;;  %v959_v48 = vadd.f32 %v958_v34, %v957_v32  ;;  %v1010_v35 = vadd.f32 %v1009_v47, %v1008_v27  ;;  %v1015_v62 = vadd.f32 %v1014_v41, %v1013_v4 }
 0x38e   :  { %v998_v44 = vadd.f32 %v997_v59, %v996_v23  ;;  %v949_v25 = vadd.f32 %v948_v8, %v947_v14  ;;  %v1037_v39 = vsel %vm682_vm3, %v928_v53, %v1745_v37  ;;  %v1005_v56 = vadd.f32 %v1004_v20, %v1003_v63 }
 0x38f   :  { %v955_v15 = vrot.slane %v954_v5, 1  ;;  %v960_v1 = vrot.slane %v959_v48, 2  ;;  %v1011_v30 = vrot.slane %v1010_v35, 1  ;;  %v1016_v18 = vrot.slane %v1015_v62, 2 }
 0x390   :  { %v1044_v31 = vsel %vm682_vm3, %v984_v36, %v1043_v6  ;;  %v1038_v52 = vsel %vm684_vm4, %v935_v54, %v1037_v39 }
 0x391   :  { %v961_v10 = vadd.f32 %v960_v1, %v959_v48  ;;  %v956_v50 = vadd.f32 %v955_v15, %v954_v5  ;;  %v1017_v51 = vadd.f32 %v1016_v18, %v1015_v62  ;;  %v1012_v57 = vadd.f32 %v1011_v30, %v1010_v35 }
 0x392   :  { %v1045_v11 = vsel %vm684_vm4, %v991_v0, %v1044_v31  ;;  %v1039_v9 = vsel %vm686_vm5, %v942_v55, %v1038_v52 }
 0x393   :  { %v962_v58 = vrot.slane %v961_v10, 1  ;;  %v1018_v21 = vrot.slane %v1017_v51, 1  ;;  %v1046_v40 = vsel %vm686_vm5, %v998_v44, %v1045_v11  ;;  %v1040_v37 = vsel %vm688_vm6, %v949_v25, %v1039_v9 }
 0x394   :  { %v1041_v22 = vsel %vm690_vm7, %v956_v50, %v1040_v37  ;;  %v1047_v17 = vsel %vm688_vm6, %v1005_v56, %v1046_v40 }
 0x395   :  { %v963_v26 = vadd.f32 %v962_v58, %v961_v10  ;;  %v1019_v24 = vadd.f32 %v1018_v21, %v1017_v51  ;;  %v1048_v38 = vsel %vm690_vm7, %v1012_v57, %v1047_v17 }
 0x397   :  { %v1042_v19 = vsel %vm692_vm8, %v963_v26, %v1041_v22  ;;  %v1049_v3 = vsel %vm692_vm8, %v1019_v24, %v1048_v38 }
 0x398   :  { %1052 = vst.msk [vmem:[#allocation6] sm:$0xff] %vm70_vm0, %v1042_v19  ;;  %1053 = vst.msk [vmem:[#allocation6 + $0x8] sm:$0xff] %vm70_vm0, %v1049_v3 }
 0x399   :  { %1285 = shalt.err (!%p1282_p12)
}
 0x39a   :  { %s1286_s14 = scalar_lea.hbm %s1792_s6, 256 }
 0x39b   :  { %p1287_p13 = scmp.ne.s32.totalorder %s1792_s6, %s1286_s14  ;;  %p1290_p0 = scmp.lt.u32.totalorder %s1286_s14, %s1792_s6 }
 0x39d   :  { %p1292_p1 = pnand %p1290_p0, %p1287_p13 }
 0x39f   :  { %1295 = shalt.err (!%p1292_p1)
}
 0x3a0   :  { %1065 = dma.vmem_to_hbm [thread:$0]  %s1060_s10, 256, %s1792_s6, [#allocation5], %s1301_s7, %s1301_s7, %s1302_s8  }
 0x3a1   :  { %1298 = dma.done.wait [#allocation5], 256  }
 0x3a2   :  { %1299 = vsyncadd [#allocation5], 4294967040 }
 0x3a3   :  { %1069 = vsyncpa [#allocation4], 1 }
 0x3a4   :  { %1070 = vsyncpa [#allocation5], 1 }

</bundles_post_ra>
